<compile_context>
chip_gen: v7x
topology: tpu7x:2x2x1
jax: 0.10.0
libtpu: 0.0.40
codegen_flags: <defaults>
</compile_context>

<pallas_src>
import math

import jax
import jax.numpy as jnp
from jax.experimental import pallas as pl
from jax.experimental.pallas import tpu as pltpu


def snake_kernel(x_ref, p_ref, o_ref):
    # x_ref: (TILE_M, F) input tile (input dtype)
    # p_ref: (2, F) float32 params: row 0 = a, row 1 = 1/a (precomputed)
    # o_ref: (TILE_M, F) output tile (input dtype)
    x = x_ref[...].astype(jnp.float32)
    a = p_ref[0:1, :]        # (1, F), broadcast over rows
    inv_a = p_ref[1:2, :]    # (1, F)
    s = jnp.sin(x * a)
    o_ref[...] = (x + inv_a * (s * s)).astype(o_ref.dtype)


def _sublane_multiple(itemsize):
    # Packed-sublane row multiple: f32 -> 8, bf16 -> 16, int8/fp8 -> 32.
    return max(8, 32 // max(1, itemsize))


def _choose_tile_m(M, F, itemsize, target_bytes=4 << 20):
    """Row tile: ~4 MiB lane-dense blocks, dtype-aware sublane multiple.

    No forced step count: single-TC chips (v5e/v6e) only pay for extra grid
    steps.  For v7x megacore we just make sure there are >= 2 blocks when the
    input is big enough for both cores to get work.
    """
    sub = _sublane_multiple(itemsize)
    row_bytes = max(1, F * itemsize)
    tm = max(sub, (target_bytes // row_bytes) // sub * sub)
    m_ceil = -(-M // sub) * sub          # rows rounded up to sublane multiple
    tm = min(tm, m_ceil)
    if -(-M // tm) < 2 and M > sub:      # give megacore a 2nd block if possible
        half = -(-M // 2)
        tm = max(sub, -(-half // sub) * sub)
    return tm


def snake(x, a, *, tile_m=None):
    """Apply Snake elementwise.  x: (..., F), a: (F,)."""
    orig_shape = x.shape
    F = orig_shape[-1]
    assert a.shape == (F,), f"a must have shape ({F},), got {a.shape}"

    x2d = x.reshape(-1, F)
    a32 = a.astype(jnp.float32)
    M, Fk = x2d.shape

    # Lane-dense folding: if F is not a multiple of 128, fold k consecutive
    # rows into the lane dimension (and tile `a` k times) so output stores are
    # unmasked full-lane vst's.  Falls back gracefully if M % k != 0.
    if Fk % 128 != 0:
        k = 128 // math.gcd(Fk, 128)
        if k > 1 and M % k == 0 and M // k > 0:
            x2d = x2d.reshape(M // k, Fk * k)
            a32 = jnp.tile(a32, k)
            M, Fk = x2d.shape

    # Hoist the per-feature reciprocal out of the grid loop and pack both
    # per-feature vectors into one (2, F) input -> single small DMA stream.
    params = jnp.stack([a32, 1.0 / a32], axis=0)  # (2, Fk) float32

    itemsize = x2d.dtype.itemsize
    if tile_m is None:
        tile_m = _choose_tile_m(M, Fk, itemsize)

    grid_m = pl.cdiv(M, tile_m)

    cost = pl.CostEstimate(
        flops=5 * M * Fk,
        transcendentals=M * Fk,
        bytes_accessed=2 * M * Fk * itemsize + 2 * Fk * 4,
    )

    out = pl.pallas_call(
        snake_kernel,
        out_shape=jax.ShapeDtypeStruct((M, Fk), x2d.dtype),
        grid_spec=pltpu.PrefetchScalarGridSpec(
            num_scalar_prefetch=0,
            grid=(grid_m,),
            in_specs=[
                pl.BlockSpec((tile_m, Fk), lambda i: (i, 0)),
                pl.BlockSpec((2, Fk), lambda i: (0, 0)),
            ],
            out_specs=pl.BlockSpec((tile_m, Fk), lambda i: (i, 0)),
        ),
        compiler_params=pltpu.CompilerParams(
            dimension_semantics=("parallel",),
            vmem_limit_bytes=40 << 20,
        ),
        cost_estimate=cost,
    )(x2d, params)

    return out.reshape(orig_shape)


def snake_reference(x, a):
    """Pure-JAX reference matching the PyTorch forward exactly (f32 math)."""
    xf = x.astype(jnp.float32)
    af = a.astype(jnp.float32)
    out = xf + 1.0 / af * jnp.power(jnp.sin(xf * af), 2)
    return out.astype(x.dtype)


if __name__ == "__main__":
    key = jax.random.PRNGKey(0)
    kx, ka, kx2, kx3, ka3 = jax.random.split(key, 5)

    # Shapes consistent with the module: Snake(in_features=128) applied to
    # an input of shape (batch=2, seq=8, hidden=128).
    in_features = 128
    x = jax.random.normal(kx, (2, 8, in_features), dtype=jnp.float32)
    # Deterministic synthetic init of `a` (module default draws a ~ Exp(1)).
    a = jax.random.exponential(ka, (in_features,), dtype=jnp.float32)

    out = jax.block_until_ready(snake(x, a))
    ref = snake_reference(x, a)
    assert out.shape == x.shape and out.dtype == x.dtype
    assert jnp.allclose(out, ref, atol=1e-5, rtol=1e-5), "mismatch vs reference"

    # Ragged-tail case: leading rows not a multiple of the row tile.
    x2 = jax.random.normal(kx2, (3, 5, in_features), dtype=jnp.float32)
    out2 = jax.block_until_ready(snake(x2, a))
    ref2 = snake_reference(x2, a)
    assert out2.shape == x2.shape
    assert jnp.allclose(out2, ref2, atol=1e-5, rtol=1e-5), "mismatch (ragged tail)"

    # Narrow-feature case (F=32): exercises the lane-folding path.
    f_small = 32
    x3 = jax.random.normal(kx3, (2, 4, f_small), dtype=jnp.float32)
    a3 = jax.random.exponential(ka3, (f_small,), dtype=jnp.float32)
    out3 = jax.block_until_ready(snake(x3, a3))
    ref3 = snake_reference(x3, a3)
    assert out3.shape == x3.shape
    assert jnp.allclose(out3, ref3, atol=1e-5, rtol=1e-5), "mismatch (F=32 fold)"

    # bf16 input: f32 math in-kernel, final cast to bf16 (same path as ref).
    xb = x.astype(jnp.bfloat16)
    outb = jax.block_until_ready(snake(xb, a))
    refb = snake_reference(xb, a)
    assert outb.dtype == jnp.bfloat16
    assert jnp.allclose(outb.astype(jnp.float32), refb.astype(jnp.float32),
                        atol=1e-2, rtol=1e-2), "mismatch (bf16)"

    print("KERNEL_OK")
</pallas_src>

<mosaic_0001>
module attributes {stable_mosaic.version = 11 : i64} {
  func.func @snake_kernel(%arg0: i32, %arg1: memref<8x128xf32, #tpu.memory_space<vmem>>, %arg2: memref<2x128xf32, #tpu.memory_space<vmem>>, %arg3: memref<8x128xf32, #tpu.memory_space<vmem>>) attributes {dimension_semantics = [#tpu.dimension_semantics<parallel>], iteration_bounds = array<i64: 2>, scalar_prefetch = 0 : i64, scratch_operands = 0 : i64, tpu.core_type = #tpu.core_type<tc>, window_params = [{transform_indices = @transform_0, window_bounds = array<i64: 8, 128>}, {pipeline_mode = #tpu.pipeline_mode<synchronous>, transform_indices = @transform_1, window_bounds = array<i64: 2, 128>}, {transform_indices = @transform_2, window_bounds = array<i64: 8, 128>}]} {
    %c0 = arith.constant 0 : index
    %c0_0 = arith.constant 0 : index
    %0 = vector.load %arg1[%c0, %c0_0] : memref<8x128xf32, #tpu.memory_space<vmem>>, vector<8x128xf32>
    %c0_1 = arith.constant 0 : index
    %c0_2 = arith.constant 0 : index
    %1 = vector.load %arg2[%c0_1, %c0_2] : memref<2x128xf32, #tpu.memory_space<vmem>>, vector<1x128xf32>
    %c1 = arith.constant 1 : index
    %c0_3 = arith.constant 0 : index
    %2 = vector.load %arg2[%c1, %c0_3] : memref<2x128xf32, #tpu.memory_space<vmem>>, vector<1x128xf32>
    %3 = vector.broadcast %1 : vector<1x128xf32> to vector<8x128xf32>
    %4 = arith.mulf %0, %3 : vector<8x128xf32>
    %5 = math.sin %4 : vector<8x128xf32>
    %6 = arith.mulf %5, %5 : vector<8x128xf32>
    %7 = vector.broadcast %2 : vector<1x128xf32> to vector<8x128xf32>
    %8 = arith.mulf %7, %6 : vector<8x128xf32>
    %9 = arith.addf %0, %8 : vector<8x128xf32>
    %c0_4 = arith.constant 0 : index
    %c0_5 = arith.constant 0 : index
    %10 = vector.load %arg3[%c0_4, %c0_5] : memref<8x128xf32, #tpu.memory_space<vmem>>, vector<8x128xf32>
    tpu.vector_store %arg3[%c0_4, %c0_5], %9 {strides = array<i32>} : memref<8x128xf32, #tpu.memory_space<vmem>>, vector<8x128xf32>,
    return
  }
  func.func @transform_0(%arg0: i32) -> (i32, i32) {
    %c0_i32 = arith.constant 0 : i32
    %c0_i32_0 = arith.constant 0 : i32
    return %arg0, %c0_i32 : i32, i32
  }
  func.func @transform_1(%arg0: i32) -> (i32, i32) {
    %c0_i32 = arith.constant 0 : i32
    %c0_i32_0 = arith.constant 0 : i32
    %c0_i32_1 = arith.constant 0 : i32
    return %c0_i32, %c0_i32_0 : i32, i32
  }
  func.func @transform_2(%arg0: i32) -> (i32, i32) {
    %c0_i32 = arith.constant 0 : i32
    %c0_i32_0 = arith.constant 0 : i32
    return %arg0, %c0_i32 : i32, i32
  }
}

</mosaic_0001>

<bundles_post_ra>
// kernel: tpu_custom_call.1
= control target key start
LH: loop header
LB: loop body
LE: loop exit
PB: predicated region body
PF: predicated region fallthrough
CT: control target
= control target key end

     0   :  { %7 = vsyncpa [#allocation3], 0  ;;  %s758_s0 = inlined_call_operand.hbm [shape: f32[16,128], index: 0, kind: input, shape index: {}]   ;;  %s759_s1 = inlined_call_operand.vmem [shape: f32[2,128], index: 1, kind: input, shape index: {}]   ;;  %s760_s2 = inlined_call_operand.hbm [shape: f32[16,128], index: 2, kind: output, shape index: {}]  }
   0x1   :  { %9 = vsyncpa [#allocation3 + $0x1], 0 }
   0x2   :  { %10 = vsyncpa [#allocation4], 0 }
   0x3   :  { %12 = vsyncpa [#allocation4 + $0x1], 0  ;;  %s562_s9 = smov 0   ;;  %s564_s10 = smov 0  }
   0x4   :  { %s566_s11 = smov 0   ;;  %s568_s12 = smov 0  }
   0x5 LB: > { %s583_s13 = sadd.s32 4294967295, %s537_s12   ;;  %s363_s14 = sadd.s32 4294967294, %s537_s12   ;;  %s537_s12 = sphi %s568_s12, %s775_s12   ;;  %s533_s11 = sphi %s566_s11, %s774_s11   ;;  %s529_s10 = sphi %s564_s10, %s773_s10   ;;  %s525_s9 = sphi %s562_s9, %s772_s9  }
   0x6   : > { %s587_s15 = sadd.s32 1, %s537_s12   ;;  %s25_s16 = sadd.s32 1, %s533_s11 }
   0x7   : > { %s22_s17 = ssub.s32 %s537_s12, %s587_s15  ;;  %p32_p0 = scmp.ne.s32.totalorder %s533_s11, %s529_s10 }
   0x8   : > { %p23_p1 = scmp.eq.s32.totalorder %s22_s17, 0  ;;  %p33_p2 = scmp.eq.s32.totalorder %s537_s12, 0 }
   0x9   : > { %p38_p3 = scmp.ne.s32.totalorder %s529_s10, %s525_s9  ;;  %p39_p4 = scmp.eq.s32.totalorder %s583_s13, 0 }
   0xa   : > { %s599_s18 = scalar_select %p23_p1, %s533_s11, %s25_s16  }
   0xb   : > { %p601_p5 = por %p33_p2, %p32_p0  ;;  %p605_p6 = por %p39_p4, %p38_p3 }
   0xc   : > { %p83_p7 = scmp.eq.s32.totalorder %s583_s13, 1  ;;  %p89_p8 = scmp.eq.s32.totalorder %s363_s14, 1 }
   0xd   : > { %p397_p10 = scmp.lt.s32.totalorder %s537_s12, 2  ;;  %s112_s23 = sand.u32 1, %s533_s11  }
   0xe   : > { %p612_p11 = por %p83_p7, %p32_p0  ;;  %p616_p12 = por %p89_p8, %p38_p3 }
   0xf   : > { %s367_s24 = sshll.u32 %s537_s12, 7  ;;  %s366_s25 = sshll.u32 %s112_s23, 3 }
  0x10   : > { %s764_s21 = scalar_select %p612_p11, 1, 0 }
  0x11   : > { %s765_s22 = scalar_select %p616_p12, 1, 0 }
  0x12   : > { %s625_s28 = scalar_lea.hbm %s758_s0, %s367_s24  ;;  %s116_s29 = scalar_lea.vmem [#allocation2], %s366_s25 }
  0x13   : > { %s123_s30 = sshll.u32 %s116_s29, 4  ;;  %p629_p13 = pnand %p397_p10, %p601_p5  ;;  %s633_s30 = int_to_ptr.vmem [resolvable:$true] %s123_s30 }
  0x14   : > { %s113_s4 = scalar_lea.sflag [#allocation3], %s112_s23  ;;  %s441_s5 = scalar_lea.hbm %s625_s28, 128 }
  0x15   : > { %p442_p2 = scmp.ne.s32.totalorder %s625_s28, %s441_s5  ;;  %p443_p3 = pneg %p629_p13 }
  0x16   : > { %s446_s8 = scalar_lea.hbm %s758_s0, 256  ;;  %p447_p5 = scmp.lt.u32.totalorder %s625_s28, %s758_s0 }
  0x17   : > { %p444_p4 = pnand %p443_p3, %p442_p2  ;;  %p448_p8 = scmp.lt.u32.totalorder %s446_s8, %s441_s5 }
  0x18   : > { %p450_p9 = scmp.lt.u32.totalorder %s441_s5, %s625_s28 }
  0x19   : > { %p445_p7 = pneg %p444_p4  ;;  %p449_p10 = por %p448_p8, %p447_p5 }
  0x1b   : > { %p451_p0 = por %p450_p9, %p449_p10 }
  0x1d   : > { %p452_p1 = pnand %p451_p0, %p445_p7 }
  0x1f   : > { %455 = shalt.err (!%p452_p1)
}
  0x20   : > { %s456_s17 = scalar_lea.vmem %s633_s30, 128  ;;  %s539_s19 = smov [#allocation2]  }
  0x21   : > { %p457_p2 = scmp.ne.s32.totalorder %s633_s30, %s456_s17  ;;  %s461_s23 = sshll.u32 %s539_s19, 4  ;;  %s462_s23 = int_to_ptr.vmem [resolvable:$false] %s461_s23 }
  0x22   : > { %s463_s24 = scalar_lea.vmem %s462_s23, 256  ;;  %p464_p11 = scmp.lt.s32.totalorder %s633_s30, %s462_s23 }
  0x23   : > { %p459_p4 = pnand %p457_p2, %p443_p3  ;;  %p465_p5 = scmp.lt.s32.totalorder %s463_s24, %s456_s17 }
  0x25   : > { %p460_p12 = pneg %p459_p4  ;;  %p466_p8 = por %p465_p5, %p464_p11 }
  0x27   : > { %p467_p9 = pnand %p466_p8, %p460_p12 }
  0x29   : > { %470 = shalt.err (!%p467_p9)
}
  0x2a   : > { %392 = dma.hbm_to_vmem [thread:$0]  (!%p629_p13), %s625_s28, 128, %s633_s30, %s113_s4  }
  0x2b   : > { %p767_p0 = scmp.lt.s32.totalorder %s537_s12, 3  ;;  %p768_p1 = scmp.ge.s32.totalorder %s537_s12, 1 }
  0x2d   : > { %p129_p3 = pnand %p768_p1, %p767_p0 }
  0x2e   : > { %s667_s25 = sand.u32 (!%p129_p3), 1, %s529_s10  }
  0x2f   : > { %132 = sbr.rel (%p129_p3) target bundleno = 159 (0x9f), region = 28  ;;  %s369_s26 = sshll.u32 (!%p129_p3), %s667_s25, 3 }
  0x30   : > { %s135_s27 = scalar_lea.sflag (!%p129_p3), [#allocation3], %s667_s25  ;;  %s138_s29 = scalar_lea.vmem (!%p129_p3), [#allocation2], %s369_s26 }
  0x36   : > { %516 = dma.done.wait (%p605_p6), %s135_s27, 128  }
  0x37   : > { %518 = vsyncadd (%p605_p6), %s135_s27, 4294967168  ;;  %v677_v0 = vld [vmem:[%s138_s29] sm:$0xff]  ;;  %v540_v14 = vmov 683565275   ;;  %v541_v16 = vmov 2475754826  }
  0x38   : > { %v371_v1 = vld [vmem:[%s759_s1] ss:$0 sm:$0xff]  ;;  %v542_v18 = vmov 2131351028   ;;  %v543_v20 = vmov 2102212464  }
  0x39   : > { %v683_v2 = vmul.f32 %v371_v1, %v677_v0  ;;  %v544_v22 = vmov 920167782   ;;  %v545_v29 = vmov 1326507024   ;;  %s158_s4 = scalar_lea.vmem [#allocation5], %s369_s26  ;;  %s378_s6 = sshll.u32 %s583_s13, 7 }
  0x3a   : > { %s293_s5 = sshll.u32 %s158_s4, 4  ;;  %s716_s14 = scalar_lea.hbm %s760_s2, %s378_s6  ;;  %s711_s5 = int_to_ptr.vmem [resolvable:$true] %s293_s5 }
  0x3b   : > { %v170_v3 = vand.u32 2139095040, %v683_v2  ;;  %v167_v5 = vand.u32 2147483647, %v683_v2  ;;  %vm169_vm7 = vcmp.lt.s32.totalorder %v683_v2, 0  ;;  %vm259_vm12 = vweird.f32 %v683_v2  ;;  %s280_s16 = scalar_lea.sflag [#allocation4], %s667_s25  ;;  %s471_s17 = scalar_lea.vmem %s711_s5, 128 }
  0x3c   : > { %p472_p6 = scmp.ne.s32.totalorder %s711_s5, %s471_s17  ;;  %p769_p11 = scmp.ne.s32.totalorder %s764_s21, 0 }
  0x3d   : > { %v171_v4 = vshrl.u32 %v170_v3, 23  ;;  %v174_v8 = vand.u32 8388607, %v167_v5  ;;  %vm168_vm8 = vcmp.le.f32.partialorder %v167_v5, 0.7853982  ;;  %s546_s13 = smov [#allocation5]  }
  0x3e   : > { %p473_p12 = pnand %p472_p6, %p769_p11  ;;  %s475_s19 = sshll.u32 %s546_s13, 4  ;;  %s476_s19 = int_to_ptr.vmem [resolvable:$false] %s475_s19 }
  0x3f   : > { %v372_v6 = vadd.s32 4294967169, %v171_v4  ;;  %v175_v11 = vor.u32 8388608, %v174_v8  ;;  %s477_s23 = scalar_lea.vmem %s476_s19, 256  ;;  %p478_p7 = scmp.lt.s32.totalorder %s711_s5, %s476_s19 }
  0x40   : > { %p474_p13 = pneg %p473_p12  ;;  %p479_p10 = scmp.lt.s32.totalorder %s477_s23, %s471_s17 }
  0x41   : > { %v177_v7 = vadd.s32 1, %v372_v6  ;;  %v215_v31 = vshll.u32 %v175_v11, 8 }
  0x42   : > { %p480_p2 = por %p479_p10, %p478_p7 }
  0x43   : > { %vm178_vm0 = vcmp.gt.s32.totalorder %v177_v7, 0 }
  0x44   : > { %v179_v9 = vsel %vm178_vm0, %v177_v7, 0  ;;  %p481_p4 = pnand %p480_p2, %p474_p13 }
  0x45   : > { %v181_v10 = vand.u32 31, %v179_v9  ;;  %v180_v12 = vshrl.u32 %v179_v9, 5 }
  0x47   : > { %v182_v13 = vsub.s32 32, %v181_v10  ;;  %v184_v15 = vshll.u32 %v540_v14, %v181_v10  ;;  %v187_v17 = vshll.u32 %v541_v16, %v181_v10  ;;  %v190_v19 = vshll.u32 %v542_v18, %v181_v10 }
  0x48   : > { %v193_v21 = vshll.u32 %v543_v20, %v181_v10  ;;  %v196_v23 = vshll.u32 %v544_v22, %v181_v10  ;;  %vm199_vm1 = vcmp.lt.s32.totalorder %v180_v12, 1  ;;  %vm202_vm2 = vcmp.lt.s32.totalorder %v180_v12, 4 }
  0x49   : > { %v183_v24 = vshrl.u32 %v540_v14, %v182_v13  ;;  %v185_v25 = vshrl.u32 %v541_v16, %v182_v13  ;;  %v188_v26 = vshrl.u32 %v542_v18, %v182_v13  ;;  %v191_v27 = vshrl.u32 %v543_v20, %v182_v13 }
  0x4a   : > { %v194_v28 = vshrl.u32 %v544_v22, %v182_v13  ;;  %v197_v30 = vshrl.u32 %v545_v29, %v182_v13  ;;  %vm200_vm3 = vcmp.lt.s32.totalorder %v180_v12, 2  ;;  %vm201_vm4 = vcmp.lt.s32.totalorder %v180_v12, 3 }
  0x4b   : > { %v186_v32 = vor.u32 %v185_v25, %v184_v15  ;;  %v189_v33 = vor.u32 %v188_v26, %v187_v17  ;;  %v192_v34 = vor.u32 %v191_v27, %v190_v19 }
  0x4c   : > { %v195_v35 = vor.u32 %v194_v28, %v193_v21  ;;  %v198_v36 = vor.u32 %v197_v30, %v196_v23 }
  0x4d   : > { %v203_v37 = vsel %vm199_vm1, %v183_v24, %v186_v32  ;;  %v204_v38 = vsel %vm202_vm2, %v192_v34, 2102212464  ;;  %v207_v39 = vsel %vm199_vm1, %v186_v32, %v189_v33  ;;  %v211_v40 = vsel %vm199_vm1, %v189_v33, %v192_v34 }
  0x4e   : > { %v205_v41 = vsel %vm201_vm4, %v189_v33, %v204_v38  ;;  %v208_v42 = vsel %vm202_vm2, %v195_v35, 920167782  ;;  %v212_v43 = vsel %vm202_vm2, %v198_v36, 1326507024 }
  0x4f   : > { %v209_v44 = vsel %vm201_vm4, %v192_v34, %v208_v42  ;;  %v213_v45 = vsel %vm201_vm4, %v195_v35, %v212_v43  ;;  %v206_v46 = vsel %vm200_vm3, %v203_v37, %v205_v41 }
  0x50   : > { %v210_v47 = vsel %vm200_vm3, %v207_v39, %v209_v44  ;;  %v214_v48 = vsel %vm200_vm3, %v211_v40, %v213_v45  ;;  %v222_v53 = vmul.u32 %v215_v31, %v206_v46 }
  0x51   : > { %v689_v49 = vmul.u32.u64.low %v215_v31, %v214_v48  ;;  %v690_v50 = vmul.u32.u64.high %v215_v31, %v214_v48, %v689_v49  ;;  %v692_v51 = vmul.u32.u64.low %v215_v31, %v210_v47  ;;  %v693_v52 = vmul.u32.u64.high %v215_v31, %v210_v47, %v692_v51  ;;  %v376_v31 = vld [vmem:[%s759_s1 + $0x1] ss:$0 sm:$0xff] }
  0x53   : > { %vm224_vm5 = vc.u32 %v690_v50, %v692_v51  ;;  %v225_v54 = vadd.s32 1, %v693_v52  ;;  %v223_v3 = vadd.s32 %v692_v51, %v690_v50 }
  0x55   : > { %v226_v55 = vsel %vm224_vm5, %v225_v54, %v693_v52 }
  0x56   : > { %v227_v56 = vadd.s32 %v226_v55, %v222_v53 }
  0x58   : > { %v228_v57 = vadd.s32 536870912, %v227_v56 }
  0x5a   : > { %v229_v58 = vshrl.u32 %v228_v57, 30 }
  0x5c   : > { %v230_v59 = vshll.u32 %v229_v58, 30  ;;  %v253_v16 = vsub.s32 4, %v229_v58 }
  0x5e   : > { %v231_v60 = vsub.s32 %v227_v56, %v230_v59  ;;  %v254_v19 = vsel %vm169_vm7, %v253_v16, %v229_v58 }
  0x5f   : > { %v256_v22 = vsel %vm168_vm8, 0, %v254_v19 }
  0x60   : > { %v233_v61 = vsub.s32 0, %v231_v60  ;;  %v260_v23 = vadd.s32 3, %v256_v22 }
  0x62   : > { %v373_v62 = vmin.u32 %v233_v61, %v231_v60  ;;  %v261_v24 = vand.u32 3, %v260_v23 }
  0x64   : > { %v235_v63 = vclz %v373_v62  ;;  %vm266_vm9 = vcmp.eq.s32.totalorder %v261_v24, 2  ;;  %vm263_vm10 = vcmp.eq.s32.totalorder %v261_v24, 0  ;;  %vm262_vm11 = vcmp.lt.s32.totalorder %v261_v24, 2 }
  0x66   : > { %v374_v1 = vadd.s32 4294967294, %v235_v63 }
  0x68   : > { %vm375_vm6 = vcmp.lt.s32.totalorder %v374_v1, 0 }
  0x69   : > { %v238_v4 = vsel %vm375_vm6, 0, %v374_v1 }
  0x6a   : > { %v239_v6 = vsub.s32 32, %v238_v4  ;;  %v240_v7 = vshll.u32 %v231_v60, %v238_v4  ;;  %v243_v8 = vsub.s32 4294967266, %v238_v4 }
  0x6c   : > { %v241_v9 = vshrl.u32 %v223_v3, %v239_v6  ;;  %v244_v10 = vadd.s32 127, %v243_v8 }
  0x6e   : > { %v242_v11 = vor.u32 %v241_v9, %v240_v7  ;;  %v245_v12 = vshll.u32 %v244_v10, 23 }
  0x70   : > { %v246_v13 = vor.u32 4788187, %v245_v12  ;;  %v249_v14 = vcvt.s32.f32 %v242_v11 }
  0x72   : > { %v247_v15 = vand.u32 2147483647, %v246_v13 }
  0x74   : > { %v250_v17 = vmul.f32 %v249_v14, %v247_v15 }
  0x76   : > { %v251_v18 = vxor.u32 2147483648, %v250_v17 }
  0x78   : > { %v252_v20 = vsel %vm169_vm7, %v251_v18, %v250_v17 }
  0x79   : > { %v255_v21 = vsel %vm168_vm8, %v683_v2, %v252_v20 }
  0x7a   : > { %437 = vcosq.f32 %v255_v21 }
  0x7b   : > { %439 = vsinq.f32 %v255_v21 }
  0x84   : > { %v438_v25 = vpop.eup %437 }
  0x85   : > { %v440_v26 = vpop.eup %439  ;;  %v267_v27 = vxor.u32 2147483648, %v438_v25 }
  0x86   : > { %v264_v28 = vxor.u32 2147483648, %v440_v26 }
  0x87   : > { %v268_v5 = vsel %vm266_vm9, %v267_v27, %v440_v26 }
  0x88   : > { %v265_v29 = vsel %vm263_vm10, %v438_v25, %v264_v28 }
  0x89   : > { %v269_v30 = vsel %vm262_vm11, %v265_v29, %v268_v5 }
  0x8a   : > { %v270_v32 = vsel %vm259_vm12, nan, %v269_v30 }
  0x8b   : > { %v271_v33 = vmul.f32 %v270_v32, %v270_v32 }
  0x8d   : > { %v276_v34 = vmul.f32 %v376_v31, %v271_v33 }
  0x8f   : > { %v277_v35 = vadd.f32 %v276_v34, %v677_v0 }
  0x91   : > { %278 = vst [vmem:[%s158_s4] sm:$0xff] %v277_v35 }
  0x92   : > { %484 = shalt.err (!%p481_p4)
}
  0x93   : > { %s485_s24 = scalar_lea.hbm %s716_s14, 128  ;;  %s489_s27 = scalar_lea.hbm %s760_s2, 256 }
  0x94   : > { %p486_p5 = scmp.ne.s32.totalorder %s716_s14, %s485_s24  ;;  %p490_p0 = scmp.lt.u32.totalorder %s716_s14, %s760_s2 }
  0x95   : > { %p491_p1 = scmp.lt.u32.totalorder %s489_s27, %s485_s24  ;;  %p493_p6 = scmp.lt.u32.totalorder %s485_s24, %s716_s14 }
  0x96   : > { %p487_p8 = pnand %p486_p5, %p769_p11 }
  0x97   : > { %p492_p3 = por %p491_p1, %p490_p0 }
  0x98   : > { %p488_p9 = pneg %p487_p8 }
  0x99   : > { %p494_p12 = por %p493_p6, %p492_p3 }
  0x9b   : > { %p495_p13 = pnand %p494_p12, %p488_p9 }
  0x9d   : > { %498 = shalt.err (!%p495_p13)
}
  0x9e   : > { %387 = dma.vmem_to_hbm [thread:$0]  (%p769_p11), %s711_s5, 128, %s716_s14, %s280_s16  }
  0x9f PF: > { %s305_s30 = sand.u32 1, %s525_s9   ;;  %p770_p7 = scmp.ne.s32.totalorder %s765_s22, 0 }
  0xa0   : > { %p771_p10 = scmp.ge.s32.totalorder %s537_s12, 2  ;;  %s306_s20 = scalar_lea.sflag [#allocation4], %s305_s30 }
  0xa2   : > { %p394_p2 = pnand %p771_p10, %p770_p7 }
  0xa4   : > { %520 = dma.done.wait (!%p394_p2), %s306_s20, 128  }
  0xa5   : > { %522 = vsyncadd (!%p394_p2), %s306_s20, 4294967168  ;;  %p15_p4 = scmp.ge.s32.totalorder %s587_s15, 4   ;;  %s772_s9 = smov %s529_s10 }
  0xa6   : > { %s773_s10 = smov %s533_s11  ;;  %s774_s11 = smov %s599_s18 }
  0xa7   : > { %s775_s12 = smov %s587_s15  ;;  %17 = sbr.rel (!%p15_p4) target bundleno = 5 (0x5), region = 73 }
  0xae   :  { %311 = vsyncpa [#allocation3], 1 }
  0xaf   :  { %313 = vsyncpa [#allocation3 + $0x1], 1 }
  0xb0   :  { %314 = vsyncpa [#allocation4], 1 }
  0xb1   :  { %316 = vsyncpa [#allocation4 + $0x1], 1 }

</bundles_post_ra>
